<compile_context>
chip_gen: v5e
topology: v5e:2x2
jax: 0.10.0
libtpu: 0.0.40
codegen_flags: <defaults>
</compile_context>

<pallas_src>
import jax
import jax.numpy as jnp
from jax.experimental import pallas as pl
from jax.experimental.pallas import tpu as pltpu


def _round_up(n, m):
    return ((n + m - 1) // m) * m


def _sublane_multiple(dtype):
    # f32 -> 8 rows/sublane-tile, bf16 -> 16, int8/fp8 -> 32 (packed rows).
    return max(8, 32 // jnp.dtype(dtype).itemsize)


def _vmem_capacity_bytes():
    try:
        info = pltpu.get_tpu_info()
        cap = getattr(info, "vmem_capacity_bytes", None)
        if cap:
            return int(cap)
    except Exception:
        pass
    return 64 * 1024 * 1024  # conservative default (v7x per-TensorCore)


def _lora_kernel(x_ref, a_ref, b_ref, o_ref):
    # Row tile of tokens: (tm, Dp) in the input dtype (no eager up-cast).
    x = x_ref[...]

    # Down-projection: (tm, Dp) @ (Dp, Rs) -> (tm, Rs), f32 accumulation.
    xa = jnp.dot(x, a_ref[...], preferred_element_type=jnp.float32)

    # Up-projection: (tm, Rs) @ (Rs, Dp) -> (tm, Dp), f32 accumulation.
    # Cast the small intermediate to the weight dtype so bf16 weights keep
    # bf16 MXU throughput (exact no-op for f32 weights).
    up = jnp.dot(xa.astype(b_ref.dtype), b_ref[...],
                 preferred_element_type=jnp.float32)

    # Residual add in f32, lane-dense store in the output dtype.
    o_ref[...] = (x.astype(jnp.float32) + up).astype(o_ref.dtype)


def lora_forward(x, A, B, *, tm=None):
    """y = x + x @ A @ B for x of shape (..., original_dim)."""
    D = x.shape[-1]
    R = A.shape[-1]
    assert A.shape == (D, R) and B.shape == (R, D)

    lead_shape = x.shape[:-1]
    x2d = x.reshape(-1, D)
    M = x2d.shape[0]

    x_isz = x2d.dtype.itemsize
    w_isz = A.dtype.itemsize
    sub = _sublane_multiple(x2d.dtype)

    # Model dim padded to 128 lanes (lane-dense stores); rank padded only to
    # the weight dtype's sublane multiple — NOT to 128 — so weight HBM/VMEM
    # bytes stay ~D*R sized.  Padded rows/cols are zero => mathematically exact.
    Dp = _round_up(D, 128)
    Rs = _round_up(R, _sublane_multiple(A.dtype))

    vmem_cap = _vmem_capacity_bytes()
    if vmem_cap >= 128 * 1024 * 1024:        # v5e / v6e: 128 MiB VMEM
        hard_cap = 100 * 1024 * 1024
    else:                                    # v7x: 64 MiB per TensorCore
        hard_cap = min(56 * 1024 * 1024, (vmem_cap * 7) // 8)

    # Row-tile selection: biggest tile (<= 1024 rows) whose pipelined x/out
    # buffers + f32 temps + resident weights fit the per-generation budget.
    weight_bytes = 2 * (Dp * Rs + Rs * Dp) * w_isz        # double-buffered A, B
    per_row = 4 * Dp * x_isz + (Rs + Dp) * 4               # 2x(x+out) dbuf + f32 temps
    budget = max(int(hard_cap * 0.75) - weight_bytes, per_row * sub)
    tm_fit = max(sub, (budget // per_row // sub) * sub)
    tm = min(1024, tm_fit) if tm is None else min(tm, tm_fit)
    tm = max(sub, (tm // sub) * sub)
    tm = min(tm, _round_up(M, sub))

    # Keep at least two grid steps when there is enough work so the "parallel"
    # M axis can be sharded across v7x's two TensorCores (one extra ~0.35 us
    # step on single-core chips — negligible).
    if _round_up(M, sub) // tm < 2 and M >= 2 * sub:
        tm = _round_up(-(-M // 2), sub)

    Mp = _round_up(M, tm)
    grid = (Mp // tm,)

    # Pad only when needed: the aligned common case touches no extra HBM, and
    # row-only misalignment pads rows only.
    if Mp != M or Dp != D:
        x2d = jnp.pad(x2d, ((0, Mp - M), (0, Dp - D)))
    if Dp != D or Rs != R:
        A = jnp.pad(A, ((0, Dp - D), (0, Rs - R)))
        B = jnp.pad(B, ((0, Rs - R), (0, Dp - D)))

    # VMEM request sized from the actual tiles (no blanket safety multiplier),
    # clamped below the per-generation cap computed above.
    vmem_est = (2 * tm * Dp * x_isz          # x tile, double-buffered
                + 2 * tm * Dp * x_isz        # out tile, double-buffered
                + weight_bytes               # A, B (resident, double-buffered)
                + tm * Rs * 4 + tm * Dp * 4)  # f32 intermediates
    vmem_limit = int(min(hard_cap, max(32 * 1024 * 1024, vmem_est + (4 << 20))))

    # TODO(synk): for very large D on v7x (>= 8K f32), add an inner grid axis
    # tiling Dp on the output side (B/out blocked on N) plus Buffered(1) weight
    # specs; unnecessary at LoRA sizes now that the rank is not padded to 128.

    out = pl.pallas_call(
        _lora_kernel,
        out_shape=jax.ShapeDtypeStruct((Mp, Dp), x.dtype),
        grid_spec=pltpu.PrefetchScalarGridSpec(
            num_scalar_prefetch=0,
            grid=grid,
            in_specs=[
                # Token row tile marches with the grid.
                pl.BlockSpec((tm, Dp), lambda i: (i, 0)),
                # LoRA weights: full blocks, constant index_map => VMEM-resident.
                pl.BlockSpec((Dp, Rs), lambda i: (0, 0)),
                pl.BlockSpec((Rs, Dp), lambda i: (0, 0)),
            ],
            out_specs=pl.BlockSpec((tm, Dp), lambda i: (i, 0)),
        ),
        compiler_params=pltpu.CompilerParams(
            dimension_semantics=("parallel",),
            vmem_limit_bytes=vmem_limit,
        ),
    )(x2d, A, B)

    return out[:M, :D].reshape(*lead_shape, D)


def init_params(key, original_dim, lora_rank, dtype=jnp.float32):
    """Matches torch init: A, B = randn(...) * 0.01."""
    ka, kb = jax.random.split(key)
    A = (jax.random.normal(ka, (original_dim, lora_rank)) * 0.01).astype(dtype)
    B = (jax.random.normal(kb, (lora_rank, original_dim)) * 0.01).astype(dtype)
    return A, B


if __name__ == "__main__":
    # Small shapes consistent with the module; non-multiple-of-128 dim
    # exercises the lane-dense padding path, M=16 exercises the 2-step grid.
    batch, seq = 2, 8
    original_dim, lora_rank = 96, 8

    key = jax.random.PRNGKey(0)
    kx, kp = jax.random.split(key)
    x = jax.random.normal(kx, (batch, seq, original_dim), dtype=jnp.float32)
    A, B = init_params(kp, original_dim, lora_rank)

    fwd = jax.jit(lora_forward)
    y = fwd(x, A, B)
    jax.block_until_ready(y)

    y_ref = x + x @ A @ B
    assert y.shape == x.shape
    err = float(jnp.max(jnp.abs(y - y_ref)))
    assert jnp.allclose(y, y_ref, atol=1e-4, rtol=1e-4), err

    print("KERNEL_OK")
</pallas_src>

<mosaic_0001>
module attributes {stable_mosaic.version = 11 : i64} {
  func.func @_lora_kernel(%arg0: i32, %arg1: memref<8x128xf32, #tpu.memory_space<vmem>>, %arg2: memref<128x8xf32, #tpu.memory_space<vmem>>, %arg3: memref<8x128xf32, #tpu.memory_space<vmem>>, %arg4: memref<8x128xf32, #tpu.memory_space<vmem>>) attributes {dimension_semantics = [#tpu.dimension_semantics<parallel>], iteration_bounds = array<i64: 2>, scalar_prefetch = 0 : i64, scratch_operands = 0 : i64, tpu.core_type = #tpu.core_type<tc>, window_params = [{transform_indices = @transform_0, window_bounds = array<i64: 8, 128>}, {pipeline_mode = #tpu.pipeline_mode<synchronous>, transform_indices = @transform_1, window_bounds = array<i64: 128, 8>}, {pipeline_mode = #tpu.pipeline_mode<synchronous>, transform_indices = @transform_2, window_bounds = array<i64: 8, 128>}, {transform_indices = @transform_3, window_bounds = array<i64: 8, 128>}]} {
    %c0 = arith.constant 0 : index
    %c0_0 = arith.constant 0 : index
    %0 = vector.load %arg1[%c0, %c0_0] : memref<8x128xf32, #tpu.memory_space<vmem>>, vector<8x128xf32>
    %c0_1 = arith.constant 0 : index
    %c0_2 = arith.constant 0 : index
    %1 = vector.load %arg2[%c0_1, %c0_2] : memref<128x8xf32, #tpu.memory_space<vmem>>, vector<128x8xf32>
    %cst = arith.constant dense<0.000000e+00> : vector<8x8xf32>
    %2 = tpu.matmul %0, %1, %cst {dimension_numbers = #tpu.dot_dimension_numbers<[1], [0], [0], [1], [0, 0, 1, 1], [], []>} : vector<8x128xf32>, vector<128x8xf32>, vector<8x8xf32> -> vector<8x8xf32>
    %c0_3 = arith.constant 0 : index
    %c0_4 = arith.constant 0 : index
    %3 = vector.load %arg3[%c0_3, %c0_4] : memref<8x128xf32, #tpu.memory_space<vmem>>, vector<8x128xf32>
    %cst_5 = arith.constant dense<0.000000e+00> : vector<8x128xf32>
    %4 = tpu.matmul %2, %3, %cst_5 {dimension_numbers = #tpu.dot_dimension_numbers<[1], [0], [0], [1], [0, 0, 1, 1], [], []>} : vector<8x8xf32>, vector<8x128xf32>, vector<8x128xf32> -> vector<8x128xf32>
    %5 = arith.addf %0, %4 : vector<8x128xf32>
    %c0_6 = arith.constant 0 : index
    %c0_7 = arith.constant 0 : index
    %6 = vector.load %arg4[%c0_6, %c0_7] : memref<8x128xf32, #tpu.memory_space<vmem>>, vector<8x128xf32>
    tpu.vector_store %arg4[%c0_6, %c0_7], %5 {strides = array<i32>} : memref<8x128xf32, #tpu.memory_space<vmem>>, vector<8x128xf32>,
    return
  }
  func.func @transform_0(%arg0: i32) -> (i32, i32) {
    %c0_i32 = arith.constant 0 : i32
    %c0_i32_0 = arith.constant 0 : i32
    return %arg0, %c0_i32 : i32, i32
  }
  func.func @transform_1(%arg0: i32) -> (i32, i32) {
    %c0_i32 = arith.constant 0 : i32
    %c0_i32_0 = arith.constant 0 : i32
    %c0_i32_1 = arith.constant 0 : i32
    return %c0_i32, %c0_i32_0 : i32, i32
  }
  func.func @transform_2(%arg0: i32) -> (i32, i32) {
    %c0_i32 = arith.constant 0 : i32
    %c0_i32_0 = arith.constant 0 : i32
    %c0_i32_1 = arith.constant 0 : i32
    return %c0_i32, %c0_i32_0 : i32, i32
  }
  func.func @transform_3(%arg0: i32) -> (i32, i32) {
    %c0_i32 = arith.constant 0 : i32
    %c0_i32_0 = arith.constant 0 : i32
    return %arg0, %c0_i32 : i32, i32
  }
}

</mosaic_0001>

<bundles_post_ra>
// kernel: lora_forward.1
= control target key start
LH: loop header
LB: loop body
LE: loop exit
PB: predicated region body
PF: predicated region fallthrough
CT: control target
= control target key end

     0   :  { %s329_s12 = smov 0   ;;  %s397_s0 = inlined_call_operand.vmem [shape: f32[16,128], index: 0, kind: input, shape index: {}]   ;;  %s398_s1 = inlined_call_operand.vmem [shape: f32[128,8], index: 1, kind: input, shape index: {}]   ;;  %s399_s2 = inlined_call_operand.vmem [shape: f32[8,128], index: 2, kind: input, shape index: {}]   ;;  %s400_s3 = inlined_call_operand.vmem [shape: f32[16,128], index: 3, kind: output, shape index: {}]  }
   0x1 LB: > { %s283_s13 = sadd.s32 4294967295, %s307_s12   ;;  %p287_p0 = scmp.ge.s32.totalorder %s307_s12, 1  ;;  %s307_s12 = sphi %s329_s12, %s13_s12  }
   0x2   : > { %p136_p1 = scmp.lt.s32.totalorder %s307_s12, 3 }
   0x4   : > { %p137_p2 = pnand %p287_p0, %p136_p1 }
   0x5   : > { %p158_p3 = scmp.lt.s32.totalorder (!%p137_p2), %s283_s13, 1 }
   0x6   : > { %140 = sbr.rel (%p137_p2) target bundleno = 298 (0x12a), region = 32 }
   0xb   : > { %v182_v0 = vld [vmem:[%s398_s1 + $0x78] sm:$0xff]  ;;  %v181_v1 = vld [vmem:[%s398_s1 + $0x70] sm:$0xff]  ;;  %v180_v2 = vld [vmem:[%s398_s1 + $0x68] sm:$0xff]  ;;  %s402_s13 = smov (!%p158_p3, %s283_s13), 1  ;;  %vm204_vm0 = vcmask 64512  }
   0xc   : > { %183 = vmatpush.msra.mxu0 %v182_v0  ;;  %v179_v3 = vld [vmem:[%s398_s1 + $0x60] sm:$0xff]  ;;  %v178_v4 = vld [vmem:[%s398_s1 + $0x58] sm:$0xff]  ;;  %v177_v5 = vld [vmem:[%s398_s1 + $0x50] sm:$0xff]  ;;  %s288_s15 = sshll.u32 %s402_s13, 3 }
   0xd   : > { %v176_v6 = vld [vmem:[%s398_s1 + $0x48] sm:$0xff]  ;;  %v175_v7 = vld [vmem:[%s398_s1 + $0x40] sm:$0xff]  ;;  %v174_v8 = vld [vmem:[%s398_s1 + $0x38] sm:$0xff]  ;;  %s161_s22 = scalar_lea.vmem %s397_s0, %s288_s15  ;;  %s165_s28 = scalar_lea.vmem %s400_s3, %s288_s15 }
   0xe   : > { %184 = vmatpush.msra.mxu0 %v181_v1  ;;  %v173_v9 = vld [vmem:[%s398_s1 + $0x30] sm:$0xff]  ;;  %v172_v10 = vld [vmem:[%s398_s1 + $0x28] sm:$0xff]  ;;  %v171_v11 = vld [vmem:[%s398_s1 + $0x20] sm:$0xff] }
   0xf   : > { %v170_v12 = vld [vmem:[%s398_s1 + $0x18] sm:$0xff]  ;;  %v169_v13 = vld [vmem:[%s398_s1 + $0x10] sm:$0xff]  ;;  %v168_v14 = vld [vmem:[%s398_s1 + $0x8] sm:$0xff] }
  0x10   : > { %185 = vmatpush.msra.mxu0 %v180_v2  ;;  %v167_v15 = vld [vmem:[%s398_s1] sm:$0xff] }
  0x11   : > { %v166_v16 = vld [vmem:[%s161_s22] sm:$0xff] }
  0x12   : > { %186 = vmatpush.msra.mxu0 %v179_v3  ;;  %v203_v17 = vld [vmem:[%s399_s2] sm:$0xff] }
  0x13   : > { %223 = vmatpush.msra.mxu1 %v203_v17 }
  0x14   : > { %187 = vmatpush.msra.mxu0 %v178_v4 }
  0x16   : > { %188 = vmatpush.msra.mxu0 %v177_v5 }
  0x18   : > { %189 = vmatpush.msra.mxu0 %v176_v6 }
  0x1a   : > { %190 = vmatpush.msra.mxu0 %v175_v7 }
  0x1c   : > { %191 = vmatpush.msra.mxu0 %v174_v8 }
  0x1e   : > { %192 = vmatpush.msra.mxu0 %v173_v9 }
  0x20   : > { %193 = vmatpush.msra.mxu0 %v172_v10 }
  0x22   : > { %194 = vmatpush.msra.mxu0 %v171_v11 }
  0x24   : > { %195 = vmatpush.msra.mxu0 %v170_v12 }
  0x26   : > { %196 = vmatpush.msra.mxu0 %v169_v13 }
  0x28   : > { %197 = vmatpush.msra.mxu0 %v168_v14 }
  0x2a   : > { %198 = vmatpush.msra.mxu0 %v167_v15 }
  0x2b   : > { %199 = vmatmul.f32.vlgmr.msra.gmra.mxu0 %v166_v16 }
  0xa8   : > { %v200_v18 = vpop.f32.mrf.mxu0 }
  0xa9   : > { %290 = vmatmul.msk.f32.vlgmr.msra.gmra.mxu1 %vm204_vm0, %v200_v18 }
 0x126   : > { %v225_v19 = vpop.f32.mrf.mxu1 }
 0x127   : > { %v228_v20 = vadd.f32 %v225_v19, %v166_v16 }
 0x129   : > { %229 = vst [vmem:[%s165_s28] sm:$0xff] %v228_v20 }
 0x12a PF: > { %s13_s12 = sadd.s32 1, %s307_s12  }
 0x12b   : > { %p10_p4 = scmp.ge.s32.totalorder %s13_s12, 4  }
 0x12d   :  { %12 = sbr.rel (!%p10_p4) target bundleno = 1 (0x1), region = 62 }

</bundles_post_ra>
